<compile_context>
chip_gen: v7x
topology: tpu7x:2x2x1
jax: 0.10.0
libtpu: 0.0.40
codegen_flags: <defaults>
</compile_context>

<pallas_src>
import numpy as np
import jax
import jax.numpy as jnp
from jax.experimental import pallas as pl
from jax.experimental.pallas import tpu as pltpu


def _interp_kernel(t_ref, v_ref, r_ref, o_ref):
    """One (bB, tR) query tile against this batch-block's (bB, N) knots.

    Knots are assumed strictly increasing (scipy interp1d requirement);
    zero-width segments would produce NaN slopes.
    """
    t = t_ref[...]          # (bB, N)
    v = v_ref[...]          # (bB, N)
    r = r_ref[...]          # (bB, tR)
    n = t.shape[1]

    # Slopes on the small (bB, N-1) knot columns: one exact divide, hoisted
    # out of the per-query loop (no full-tile divides in the hot path).
    slope = (v[:, 1:] - v[:, :-1]) / (t[:, 1:] - t[:, :-1])   # (bB, N-1)

    # Hoist all knot-column slices out of the compute loop.
    t_cols = [t[:, i:i + 1] for i in range(n)]                # (bB, 1) each
    v_cols = [v[:, i:i + 1] for i in range(n)]
    s_cols = [slope[:, i:i + 1] for i in range(n - 1)]

    # "Last matching segment wins": segments are visited in ascending-t order,
    # so `r >= t_lo` alone selects the correct segment (no upper-bound compare
    # or AND needed).  Queries below t[:,0] keep the init value (left clamp);
    # queries at/above t[:,-1] are fixed with one final select (right clamp).
    acc = jnp.broadcast_to(v_cols[0], r.shape)
    # N is small/static here; for N >~ 32-64 switch to a stacked scratch +
    # lax.fori_loop(unroll=True) or a one-hot MXU gather.
    for i in range(n - 1):
        cand = v_cols[i] + (r - t_cols[i]) * s_cols[i]
        acc = jnp.where(r >= t_cols[i], cand, acc)
    acc = jnp.where(r >= t_cols[n - 1], v_cols[n - 1], acc)

    o_ref[...] = acc.astype(o_ref.dtype)


def _round_up(x, m):
    return ((x + m - 1) // m) * m


def linear_interpolator(t, v, r, *, block_b=8, block_r=1024):
    """Pallas equivalent of LinearInterpolator.forward(t, v, r)."""
    t = jnp.asarray(t, jnp.float32)
    v = jnp.asarray(v, jnp.float32)
    r = jnp.asarray(r, jnp.float32)
    B, N = t.shape
    R = r.shape[1]

    # Tile sizes: bB batches on sublanes (multiple of 8), tR queries on lanes
    # (multiple of 128, capped at block_r).  (8, 1024) f32 tiles are ~32 KiB,
    # comfortably inside scoped VMEM on v5e/v6e/v7x with double buffering.
    bB = block_b
    tR = max(128, min(block_r, _round_up(R, 128)))
    Bp = _round_up(B, bB)
    Rp = _round_up(R, tR)

    # Pad batch rows with a strictly-increasing dummy knot grid so padded rows
    # never create zero-width segments (their outputs are sliced away below),
    # and pad queries so output tiles are lane-dense (unmasked stores).
    if Bp != B:
        pad_t = jnp.broadcast_to(jnp.arange(N, dtype=jnp.float32), (Bp - B, N))
        t = jnp.concatenate([t, pad_t], axis=0)
        v = jnp.concatenate([v, jnp.zeros((Bp - B, N), jnp.float32)], axis=0)
        r = jnp.concatenate([r, jnp.zeros((Bp - B, R), jnp.float32)], axis=0)
    if Rp != R:
        r = jnp.pad(r, ((0, 0), (0, Rp - R)))

    grid = (Bp // bB, Rp // tR)
    out = pl.pallas_call(
        _interp_kernel,
        out_shape=jax.ShapeDtypeStruct((Bp, Rp), jnp.float32),
        grid=grid,
        in_specs=[
            pl.BlockSpec((bB, N), lambda i, j: (i, 0)),     # t : per batch-block
            pl.BlockSpec((bB, N), lambda i, j: (i, 0)),     # v : per batch-block
            pl.BlockSpec((bB, tR), lambda i, j: (i, j)),    # r : tiled queries
        ],
        out_specs=pl.BlockSpec((bB, tR), lambda i, j: (i, j)),
        compiler_params=pltpu.CompilerParams(
            dimension_semantics=("parallel", "parallel")),
    )(t, v, r)
    return out[:B, :R]


if __name__ == "__main__":
    key = jax.random.PRNGKey(0)
    k_t, k_v, k_r = jax.random.split(key, 3)

    B, N, R = 2, 8, 16  # batch, knots per batch, queries per batch

    # Sorted knot times per batch, knot values, and query points (some OOB).
    t = jnp.sort(jax.random.uniform(k_t, (B, N), jnp.float32, 0.0, 10.0), axis=-1)
    v = jax.random.normal(k_v, (B, N), jnp.float32)
    r = jax.random.uniform(k_r, (B, R), jnp.float32, -1.0, 11.0)

    out = linear_interpolator(t, v, r)
    out = jax.block_until_ready(out)

    # Reference: np.interp clamps to endpoints, same as fill_value=(v[0], v[-1]).
    ref = np.stack([
        np.interp(np.asarray(r[b]), np.asarray(t[b]), np.asarray(v[b]))
        for b in range(B)
    ]).astype(np.float32)
    np.testing.assert_allclose(np.asarray(out), ref, rtol=1e-5, atol=1e-5)

    print("KERNEL_OK")
</pallas_src>

<mosaic_0001>
module attributes {stable_mosaic.version = 11 : i64} {
  func.func @_interp_kernel(%arg0: i32, %arg1: i32, %arg2: memref<8x8xf32, #tpu.memory_space<vmem>>, %arg3: memref<8x8xf32, #tpu.memory_space<vmem>>, %arg4: memref<8x128xf32, #tpu.memory_space<vmem>>, %arg5: memref<8x128xf32, #tpu.memory_space<vmem>>) attributes {dimension_semantics = [#tpu.dimension_semantics<parallel>, #tpu.dimension_semantics<parallel>], iteration_bounds = array<i64: 1, 1>, scalar_prefetch = 0 : i64, scratch_operands = 0 : i64, tpu.core_type = #tpu.core_type<tc>, window_params = [{transform_indices = @transform_0, window_bounds = array<i64: 8, 8>}, {transform_indices = @transform_1, window_bounds = array<i64: 8, 8>}, {transform_indices = @transform_2, window_bounds = array<i64: 8, 128>}, {transform_indices = @transform_3, window_bounds = array<i64: 8, 128>}]} {
    %c0 = arith.constant 0 : index
    %c0_0 = arith.constant 0 : index
    %0 = vector.load %arg2[%c0, %c0_0] : memref<8x8xf32, #tpu.memory_space<vmem>>, vector<8x8xf32>
    %c0_1 = arith.constant 0 : index
    %c0_2 = arith.constant 0 : index
    %1 = vector.load %arg3[%c0_1, %c0_2] : memref<8x8xf32, #tpu.memory_space<vmem>>, vector<8x8xf32>
    %c0_3 = arith.constant 0 : index
    %c0_4 = arith.constant 0 : index
    %2 = vector.load %arg4[%c0_3, %c0_4] : memref<8x128xf32, #tpu.memory_space<vmem>>, vector<8x128xf32>
    %3 = vector.extract_strided_slice %1 {offsets = [0, 1], sizes = [8, 7], strides = [1, 1]} : vector<8x8xf32> to vector<8x7xf32>
    %4 = vector.extract_strided_slice %1 {offsets = [0, 0], sizes = [8, 7], strides = [1, 1]} : vector<8x8xf32> to vector<8x7xf32>
    %5 = arith.subf %3, %4 : vector<8x7xf32>
    %6 = vector.extract_strided_slice %0 {offsets = [0, 1], sizes = [8, 7], strides = [1, 1]} : vector<8x8xf32> to vector<8x7xf32>
    %7 = vector.extract_strided_slice %0 {offsets = [0, 0], sizes = [8, 7], strides = [1, 1]} : vector<8x8xf32> to vector<8x7xf32>
    %8 = arith.subf %6, %7 : vector<8x7xf32>
    %9 = arith.divf %5, %8 : vector<8x7xf32>
    %10 = vector.extract_strided_slice %0 {offsets = [0, 0], sizes = [8, 1], strides = [1, 1]} : vector<8x8xf32> to vector<8x1xf32>
    %11 = vector.extract_strided_slice %0 {offsets = [0, 1], sizes = [8, 1], strides = [1, 1]} : vector<8x8xf32> to vector<8x1xf32>
    %12 = vector.extract_strided_slice %0 {offsets = [0, 2], sizes = [8, 1], strides = [1, 1]} : vector<8x8xf32> to vector<8x1xf32>
    %13 = vector.extract_strided_slice %0 {offsets = [0, 3], sizes = [8, 1], strides = [1, 1]} : vector<8x8xf32> to vector<8x1xf32>
    %14 = vector.extract_strided_slice %0 {offsets = [0, 4], sizes = [8, 1], strides = [1, 1]} : vector<8x8xf32> to vector<8x1xf32>
    %15 = vector.extract_strided_slice %0 {offsets = [0, 5], sizes = [8, 1], strides = [1, 1]} : vector<8x8xf32> to vector<8x1xf32>
    %16 = vector.extract_strided_slice %0 {offsets = [0, 6], sizes = [8, 1], strides = [1, 1]} : vector<8x8xf32> to vector<8x1xf32>
    %17 = vector.extract_strided_slice %0 {offsets = [0, 7], sizes = [8, 1], strides = [1, 1]} : vector<8x8xf32> to vector<8x1xf32>
    %18 = vector.extract_strided_slice %1 {offsets = [0, 0], sizes = [8, 1], strides = [1, 1]} : vector<8x8xf32> to vector<8x1xf32>
    %19 = vector.extract_strided_slice %1 {offsets = [0, 1], sizes = [8, 1], strides = [1, 1]} : vector<8x8xf32> to vector<8x1xf32>
    %20 = vector.extract_strided_slice %1 {offsets = [0, 2], sizes = [8, 1], strides = [1, 1]} : vector<8x8xf32> to vector<8x1xf32>
    %21 = vector.extract_strided_slice %1 {offsets = [0, 3], sizes = [8, 1], strides = [1, 1]} : vector<8x8xf32> to vector<8x1xf32>
    %22 = vector.extract_strided_slice %1 {offsets = [0, 4], sizes = [8, 1], strides = [1, 1]} : vector<8x8xf32> to vector<8x1xf32>
    %23 = vector.extract_strided_slice %1 {offsets = [0, 5], sizes = [8, 1], strides = [1, 1]} : vector<8x8xf32> to vector<8x1xf32>
    %24 = vector.extract_strided_slice %1 {offsets = [0, 6], sizes = [8, 1], strides = [1, 1]} : vector<8x8xf32> to vector<8x1xf32>
    %25 = vector.extract_strided_slice %1 {offsets = [0, 7], sizes = [8, 1], strides = [1, 1]} : vector<8x8xf32> to vector<8x1xf32>
    %26 = vector.extract_strided_slice %9 {offsets = [0, 0], sizes = [8, 1], strides = [1, 1]} : vector<8x7xf32> to vector<8x1xf32>
    %27 = vector.extract_strided_slice %9 {offsets = [0, 1], sizes = [8, 1], strides = [1, 1]} : vector<8x7xf32> to vector<8x1xf32>
    %28 = vector.extract_strided_slice %9 {offsets = [0, 2], sizes = [8, 1], strides = [1, 1]} : vector<8x7xf32> to vector<8x1xf32>
    %29 = vector.extract_strided_slice %9 {offsets = [0, 3], sizes = [8, 1], strides = [1, 1]} : vector<8x7xf32> to vector<8x1xf32>
    %30 = vector.extract_strided_slice %9 {offsets = [0, 4], sizes = [8, 1], strides = [1, 1]} : vector<8x7xf32> to vector<8x1xf32>
    %31 = vector.extract_strided_slice %9 {offsets = [0, 5], sizes = [8, 1], strides = [1, 1]} : vector<8x7xf32> to vector<8x1xf32>
    %32 = vector.extract_strided_slice %9 {offsets = [0, 6], sizes = [8, 1], strides = [1, 1]} : vector<8x7xf32> to vector<8x1xf32>
    %33 = vector.shape_cast %18 : vector<8x1xf32> to vector<8x1xf32>
    %34 = vector.broadcast %33 : vector<8x1xf32> to vector<8x128xf32>
    %35 = vector.broadcast %10 : vector<8x1xf32> to vector<8x128xf32>
    %36 = arith.subf %2, %35 : vector<8x128xf32>
    %37 = vector.broadcast %26 : vector<8x1xf32> to vector<8x128xf32>
    %38 = arith.mulf %36, %37 : vector<8x128xf32>
    %39 = vector.broadcast %18 : vector<8x1xf32> to vector<8x128xf32>
    %40 = arith.addf %39, %38 : vector<8x128xf32>
    %41 = vector.broadcast %10 : vector<8x1xf32> to vector<8x128xf32>
    %42 = arith.cmpf oge, %2, %41 : vector<8x128xf32>
    %43 = arith.select %42, %40, %34 : vector<8x128xi1>, vector<8x128xf32>
    %44 = vector.broadcast %11 : vector<8x1xf32> to vector<8x128xf32>
    %45 = arith.subf %2, %44 : vector<8x128xf32>
    %46 = vector.broadcast %27 : vector<8x1xf32> to vector<8x128xf32>
    %47 = arith.mulf %45, %46 : vector<8x128xf32>
    %48 = vector.broadcast %19 : vector<8x1xf32> to vector<8x128xf32>
    %49 = arith.addf %48, %47 : vector<8x128xf32>
    %50 = vector.broadcast %11 : vector<8x1xf32> to vector<8x128xf32>
    %51 = arith.cmpf oge, %2, %50 : vector<8x128xf32>
    %52 = arith.select %51, %49, %43 : vector<8x128xi1>, vector<8x128xf32>
    %53 = vector.broadcast %12 : vector<8x1xf32> to vector<8x128xf32>
    %54 = arith.subf %2, %53 : vector<8x128xf32>
    %55 = vector.broadcast %28 : vector<8x1xf32> to vector<8x128xf32>
    %56 = arith.mulf %54, %55 : vector<8x128xf32>
    %57 = vector.broadcast %20 : vector<8x1xf32> to vector<8x128xf32>
    %58 = arith.addf %57, %56 : vector<8x128xf32>
    %59 = vector.broadcast %12 : vector<8x1xf32> to vector<8x128xf32>
    %60 = arith.cmpf oge, %2, %59 : vector<8x128xf32>
    %61 = arith.select %60, %58, %52 : vector<8x128xi1>, vector<8x128xf32>
    %62 = vector.broadcast %13 : vector<8x1xf32> to vector<8x128xf32>
    %63 = arith.subf %2, %62 : vector<8x128xf32>
    %64 = vector.broadcast %29 : vector<8x1xf32> to vector<8x128xf32>
    %65 = arith.mulf %63, %64 : vector<8x128xf32>
    %66 = vector.broadcast %21 : vector<8x1xf32> to vector<8x128xf32>
    %67 = arith.addf %66, %65 : vector<8x128xf32>
    %68 = vector.broadcast %13 : vector<8x1xf32> to vector<8x128xf32>
    %69 = arith.cmpf oge, %2, %68 : vector<8x128xf32>
    %70 = arith.select %69, %67, %61 : vector<8x128xi1>, vector<8x128xf32>
    %71 = vector.broadcast %14 : vector<8x1xf32> to vector<8x128xf32>
    %72 = arith.subf %2, %71 : vector<8x128xf32>
    %73 = vector.broadcast %30 : vector<8x1xf32> to vector<8x128xf32>
    %74 = arith.mulf %72, %73 : vector<8x128xf32>
    %75 = vector.broadcast %22 : vector<8x1xf32> to vector<8x128xf32>
    %76 = arith.addf %75, %74 : vector<8x128xf32>
    %77 = vector.broadcast %14 : vector<8x1xf32> to vector<8x128xf32>
    %78 = arith.cmpf oge, %2, %77 : vector<8x128xf32>
    %79 = arith.select %78, %76, %70 : vector<8x128xi1>, vector<8x128xf32>
    %80 = vector.broadcast %15 : vector<8x1xf32> to vector<8x128xf32>
    %81 = arith.subf %2, %80 : vector<8x128xf32>
    %82 = vector.broadcast %31 : vector<8x1xf32> to vector<8x128xf32>
    %83 = arith.mulf %81, %82 : vector<8x128xf32>
    %84 = vector.broadcast %23 : vector<8x1xf32> to vector<8x128xf32>
    %85 = arith.addf %84, %83 : vector<8x128xf32>
    %86 = vector.broadcast %15 : vector<8x1xf32> to vector<8x128xf32>
    %87 = arith.cmpf oge, %2, %86 : vector<8x128xf32>
    %88 = arith.select %87, %85, %79 : vector<8x128xi1>, vector<8x128xf32>
    %89 = vector.broadcast %16 : vector<8x1xf32> to vector<8x128xf32>
    %90 = arith.subf %2, %89 : vector<8x128xf32>
    %91 = vector.broadcast %32 : vector<8x1xf32> to vector<8x128xf32>
    %92 = arith.mulf %90, %91 : vector<8x128xf32>
    %93 = vector.broadcast %24 : vector<8x1xf32> to vector<8x128xf32>
    %94 = arith.addf %93, %92 : vector<8x128xf32>
    %95 = vector.broadcast %16 : vector<8x1xf32> to vector<8x128xf32>
    %96 = arith.cmpf oge, %2, %95 : vector<8x128xf32>
    %97 = arith.select %96, %94, %88 : vector<8x128xi1>, vector<8x128xf32>
    %98 = vector.broadcast %17 : vector<8x1xf32> to vector<8x128xf32>
    %99 = arith.cmpf oge, %2, %98 : vector<8x128xf32>
    %100 = vector.shape_cast %25 : vector<8x1xf32> to vector<8x1xf32>
    %101 = vector.broadcast %100 : vector<8x1xf32> to vector<8x128xf32>
    %102 = arith.select %99, %101, %97 : vector<8x128xi1>, vector<8x128xf32>
    %c0_5 = arith.constant 0 : index
    %c0_6 = arith.constant 0 : index
    %103 = vector.load %arg5[%c0_5, %c0_6] : memref<8x128xf32, #tpu.memory_space<vmem>>, vector<8x128xf32>
    tpu.vector_store %arg5[%c0_5, %c0_6], %102 {strides = array<i32>} : memref<8x128xf32, #tpu.memory_space<vmem>>, vector<8x128xf32>,
    return
  }
  func.func @transform_0(%arg0: i32, %arg1: i32) -> (i32, i32) {
    %c0_i32 = arith.constant 0 : i32
    %c0_i32_0 = arith.constant 0 : i32
    return %arg0, %c0_i32 : i32, i32
  }
  func.func @transform_1(%arg0: i32, %arg1: i32) -> (i32, i32) {
    %c0_i32 = arith.constant 0 : i32
    %c0_i32_0 = arith.constant 0 : i32
    return %arg0, %c0_i32 : i32, i32
  }
  func.func @transform_2(%arg0: i32, %arg1: i32) -> (i32, i32) {
    %c0_i32 = arith.constant 0 : i32
    return %arg0, %arg1 : i32, i32
  }
  func.func @transform_3(%arg0: i32, %arg1: i32) -> (i32, i32) {
    %c0_i32 = arith.constant 0 : i32
    return %arg0, %arg1 : i32, i32
  }
}

</mosaic_0001>

<bundles_post_ra>
// kernel: tpu_custom_call.1
= control target key start
LH: loop header
LB: loop body
LE: loop exit
PB: predicated region body
PF: predicated region fallthrough
CT: control target
= control target key end

     0   :  { %8 = vsyncpa [#allocation3], 0  ;;  %s422_s0 = inlined_call_operand.hbm [shape: f32[8,8], index: 0, kind: input, shape index: {}]   ;;  %s423_s1 = inlined_call_operand.hbm [shape: f32[8,8], index: 1, kind: input, shape index: {}]   ;;  %s424_s2 = inlined_call_operand.hbm [shape: f32[8,128], index: 2, kind: input, shape index: {}]   ;;  %s425_s3 = inlined_call_operand.hbm [shape: f32[8,128], index: 3, kind: output, shape index: {}]  }
   0x1   :  { %9 = vsyncpa [#allocation6], 0 }
   0x2   :  { %10 = vsyncpa [#allocation4], 0  ;;  %s341_s12 = smov [#allocation5]   ;;  %s342_s14 = smov [#allocation2]  }
   0x3   :  { %s27_s13 = sshll.u32 %s341_s12, 4  ;;  %s17_s15 = sshll.u32 %s342_s14, 4  ;;  %s28_s13 = int_to_ptr.vmem [resolvable:$true] %s27_s13  ;;  %s18_s15 = int_to_ptr.vmem [resolvable:$true] %s17_s15 }
   0x4   :  { %s247_s18 = scalar_lea.hbm %s423_s1, 128 }
   0x5   :  { %p248_p0 = scmp.ne.s32.totalorder %s423_s1, %s247_s18  ;;  %p251_p1 = scmp.lt.u32.totalorder %s247_s18, %s423_s1 }
   0x7   :  { %p253_p2 = pnand %p251_p1, %p248_p0 }
   0x9   :  { %256 = shalt.err (!%p253_p2)
}
   0xa   :  { %s257_s23 = scalar_lea.vmem %s28_s13, 128  ;;  %p262_p4 = scmp.lt.s32.totalorder %s28_s13, %s28_s13 }
   0xb   :  { %p258_p3 = scmp.ne.s32.totalorder %s28_s13, %s257_s23  ;;  %p263_p5 = scmp.lt.s32.totalorder %s257_s23, %s257_s23 }
   0xd   :  { %p264_p6 = por %p263_p5, %p262_p4 }
   0xf   :  { %p265_p7 = pnand %p264_p6, %p258_p3 }
  0x11   :  { %268 = shalt.err (!%p265_p7)
}
  0x12   :  { %30 = dma.hbm_to_vmem [thread:$0]  %s423_s1, 128, %s28_s13, [#allocation6]  }
  0x13   :  { %s269_s28 = scalar_lea.hbm %s422_s0, 128 }
  0x14   :  { %p270_p8 = scmp.ne.s32.totalorder %s422_s0, %s269_s28  ;;  %p273_p9 = scmp.lt.u32.totalorder %s269_s28, %s422_s0 }
  0x16   :  { %p275_p10 = pnand %p273_p9, %p270_p8 }
  0x18   :  { %278 = shalt.err (!%p275_p10)
}
  0x19   :  { %s279_s6 = scalar_lea.vmem %s18_s15, 128  ;;  %p284_p12 = scmp.lt.s32.totalorder %s18_s15, %s18_s15 }
  0x1a   :  { %p280_p11 = scmp.ne.s32.totalorder %s18_s15, %s279_s6  ;;  %p285_p13 = scmp.lt.s32.totalorder %s279_s6, %s279_s6 }
  0x1c   :  { %p286_p0 = por %p285_p13, %p284_p12 }
  0x1e   :  { %p287_p1 = pnand %p286_p0, %p280_p11 }
  0x20   :  { %290 = shalt.err (!%p287_p1)
}
  0x21   :  { %20 = dma.hbm_to_vmem [thread:$0]  %s422_s0, 128, %s18_s15, [#allocation3]  }
  0x22   :  { %s343_s8 = smov [#allocation7]   ;;  %s291_s12 = scalar_lea.hbm %s424_s2, 128 }
  0x23   :  { %s37_s9 = sshll.u32 %s343_s8, 4  ;;  %p292_p2 = scmp.ne.s32.totalorder %s424_s2, %s291_s12  ;;  %s38_s9 = int_to_ptr.vmem [resolvable:$true] %s37_s9 }
  0x24   :  { %p295_p3 = scmp.lt.u32.totalorder %s291_s12, %s424_s2 }
  0x26   :  { %p297_p4 = pnand %p295_p3, %p292_p2 }
  0x28   :  { %300 = shalt.err (!%p297_p4)
}
  0x29   :  { %s301_s18 = scalar_lea.vmem %s38_s9, 128  ;;  %p306_p6 = scmp.lt.s32.totalorder %s38_s9, %s38_s9 }
  0x2a   :  { %p302_p5 = scmp.ne.s32.totalorder %s38_s9, %s301_s18  ;;  %p307_p7 = scmp.lt.s32.totalorder %s301_s18, %s301_s18 }
  0x2c   :  { %p308_p8 = por %p307_p7, %p306_p6 }
  0x2e   :  { %p309_p9 = pnand %p308_p8, %p302_p5 }
  0x30   :  { %312 = shalt.err (!%p309_p9)
}
  0x31   :  { %40 = dma.hbm_to_vmem [thread:$0]  %s424_s2, 128, %s38_s9, [#allocation6]  }
  0x32   :  { %335 = dma.done.wait [#allocation3], 128  }
  0x33   :  { %336 = vsyncadd [#allocation3], 4294967168 }
  0x34   :  { %337 = dma.done.wait [#allocation6], 256  }
  0x35   :  { %338 = vsyncadd [#allocation6], 4294967040  ;;  %v344_v0 = vmov 0   ;;  %v345_v1 = vmov 5   ;;  %v50_v2 = vld [vmem:[#allocation2] sm:$0xff]  ;;  %v51_v3 = vld [vmem:[#allocation5] sm:$0xff] }
  0x36   :  { %225 = vset.pattern.permute.xlu1 %v344_v0  ;;  %230 = vset.pattern.permute.xlu0 %v345_v1  ;;  %s346_s19 = smov 1   ;;  %v347_v4 = vmov 1   ;;  %v348_v5 = vmov 6   ;;  %v349_v6 = vmov 2   ;;  %v350_v7 = vmov 4   ;;  %v52_v31 = vld [vmem:[#allocation7] sm:$0xff] }
  0x37   :  { %59 = vrot.lane.b32.xlu0 %v50_v2, %s346_s19  ;;  %66 = vperm.xlu1 %225, %v51_v3   ;;  %v351_v8 = vmov 3   ;;  %v352_v15 = vmov 7   ;;  %s353_s2 = smov [#allocation8]  }
  0x38   :  { %s202_s20 = sshll.u32 %s353_s2, 4  ;;  %s203_s20 = int_to_ptr.vmem [resolvable:$true] %s202_s20 }
  0x39   :  { %s313_s21 = scalar_lea.vmem %s203_s20, 128  ;;  %p318_p11 = scmp.lt.s32.totalorder %s203_s20, %s203_s20 }
  0x3a   :  { %p314_p10 = scmp.ne.s32.totalorder %s203_s20, %s313_s21  ;;  %p319_p12 = scmp.lt.s32.totalorder %s313_s21, %s313_s21 }
  0x3b   :  { %54 = vrot.lane.b32.xlu0 %v51_v3, %s346_s19  ;;  %70 = vperm.xlu1 %225, %v50_v2  }
  0x3c   :  { %p320_p13 = por %p319_p12, %p318_p11 }
  0x3e   :  { %p321_p0 = pnand %p320_p13, %p314_p10 }
  0x3f   :  { %226 = vset.pattern.permute.xlu1 %v347_v4  ;;  %152 = vperm.xlu0 %230, %v50_v2  }
  0x40   :  { %84 = vperm.xlu1 %226, %v50_v2  }
  0x43   :  { %232 = vset.pattern.permute.xlu0 %v348_v5 }
  0x44   :  { %227 = vset.pattern.permute.xlu1 %v349_v6  ;;  %169 = vperm.xlu0 %232, %v50_v2  }
  0x45   :  { %101 = vperm.xlu1 %227, %v50_v2  }
  0x48   :  { %233 = vset.pattern.permute.xlu0 %v350_v7 }
  0x49   :  { %228 = vset.pattern.permute.xlu1 %v351_v8  ;;  %135 = vperm.xlu0 %233, %v50_v2  }
  0x4a   :  { %118 = vperm.xlu1 %228, %v50_v2  }
  0x4d   :  { %145 = vperm.xlu0 %233, %v51_v3  }
  0x4e   :  { %229 = vset.pattern.permute.xlu1 %v347_v4 }
  0x4f   :  { %94 = vperm.xlu1 %229, %v51_v3  }
  0x51   :  { %236 = vset.pattern.permute.xlu0 %v347_v4 }
  0x53   :  { %231 = vset.pattern.permute.xlu1 %v349_v6 }
  0x54   :  { %111 = vperm.xlu1 %231, %v51_v3  }
  0x58   :  { %234 = vset.pattern.permute.xlu1 %v351_v8 }
  0x59   :  { %128 = vperm.xlu1 %234, %v51_v3  }
  0x5d   :  { %235 = vset.pattern.permute.xlu1 %v345_v1 }
  0x5e   :  { %162 = vperm.xlu1 %235, %v51_v3  }
  0x62   :  { %238 = vset.pattern.permute.xlu1 %v351_v8 }
  0xa9   :  { %v60_v9 = vpop.permute.xlu0 %59 }
  0xaa   :  { %v62_v10 = vsub.f32 %v50_v2, %v60_v9 }
  0xac   :  { %245 = vrcp.f32 %v62_v10 }
  0xad   :  { %v55_v11 = vpop.permute.xlu0 %54 }
  0xae   :  { %v57_v12 = vsub.f32 %v51_v3, %v55_v11 }
  0xb6   :  { %v246_v13 = vpop.eup %245  ;;  %v67_v16 = vpop.permute.xlu1 %66 }
  0xb7   :  { %v64_v14 = vmul.f32 %v246_v13, %v57_v12 }
  0xb9   :  { %106 = vperm.xlu1 %238, %v64_v14   ;;  %76 = vperm.xlu0 %236, %v64_v14  }
  0xba   :  { %v71_v17 = vpop.permute.xlu1 %70 }
  0xbb   :  { %v73_v33 = vsub.f32 %v52_v31, %v71_v17  ;;  %vm81_vm0 = vcmp.ge.f32.partialorder %v52_v31, %v71_v17 }
  0xbd   :  { %239 = vset.pattern.permute.xlu1 %v350_v7  ;;  %237 = vset.pattern.permute.xlu0 %v349_v6 }
  0xbe   :  { %123 = vperm.xlu1 %239, %v64_v14   ;;  %89 = vperm.xlu0 %237, %v64_v14   ;;  %v153_v22 = vpop.permute.xlu0 %152 }
  0xbf   :  { %v85_v18 = vpop.permute.xlu1 %84  ;;  %v155_v46 = vsub.f32 %v52_v31, %v153_v22  ;;  %vm166_vm5 = vcmp.ge.f32.partialorder %v52_v31, %v153_v22 }
  0xc0   :  { %v87_v35 = vsub.f32 %v52_v31, %v85_v18  ;;  %vm98_vm1 = vcmp.ge.f32.partialorder %v52_v31, %v85_v18 }
  0xc2   :  { %240 = vset.pattern.permute.xlu1 %v345_v1  ;;  %243 = vset.pattern.permute.xlu0 %v348_v5 }
  0xc3   :  { %140 = vperm.xlu1 %240, %v64_v14   ;;  %179 = vperm.xlu0 %243, %v51_v3   ;;  %v170_v24 = vpop.permute.xlu0 %169 }
  0xc4   :  { %v102_v19 = vpop.permute.xlu1 %101  ;;  %v172_v49 = vsub.f32 %v52_v31, %v170_v24  ;;  %vm183_vm6 = vcmp.ge.f32.partialorder %v52_v31, %v170_v24 }
  0xc5   :  { %v104_v39 = vsub.f32 %v52_v31, %v102_v19  ;;  %vm115_vm2 = vcmp.ge.f32.partialorder %v52_v31, %v102_v19 }
  0xc7   :  { %241 = vset.pattern.permute.xlu1 %v348_v5  ;;  %244 = vset.pattern.permute.xlu0 %v352_v15 }
  0xc8   :  { %157 = vperm.xlu1 %241, %v64_v14   ;;  %v136_v26 = vpop.permute.xlu0 %135 }
  0xc9   :  { %v119_v20 = vpop.permute.xlu1 %118  ;;  %v138_v43 = vsub.f32 %v52_v31, %v136_v26  ;;  %vm149_vm4 = vcmp.ge.f32.partialorder %v52_v31, %v136_v26 }
  0xca   :  { %v121_v45 = vsub.f32 %v52_v31, %v119_v20  ;;  %vm132_vm3 = vcmp.ge.f32.partialorder %v52_v31, %v119_v20 }
  0xcc   :  { %242 = vset.pattern.permute.xlu1 %v352_v15  ;;  %v146_v28 = vpop.permute.xlu0 %145 }
  0xcd   :  { %174 = vperm.xlu1 %242, %v64_v14  }
  0xce   :  { %v95_v21 = vpop.permute.xlu1 %94 }
  0xd1   :  { %186 = vperm.xlu1 %242, %v50_v2  }
  0xd3   :  { %v112_v23 = vpop.permute.xlu1 %111 }
  0xd5   :  { %191 = vperm.xlu1 %242, %v51_v3  }
  0xd8   :  { %v129_v25 = vpop.permute.xlu1 %128 }
  0xdd   :  { %v163_v27 = vpop.permute.xlu1 %162 }
 0x138   :  { %v107_v29 = vpop.permute.xlu1 %106  ;;  %v77_v30 = vpop.permute.xlu0 %76 }
 0x139   :  { %v79_v36 = vmul.f32 %v77_v30, %v73_v33  ;;  %v109_v44 = vmul.f32 %v107_v29, %v104_v39 }
 0x13b   :  { %v80_v40 = vadd.f32 %v79_v36, %v67_v16  ;;  %v114_v53 = vadd.f32 %v112_v23, %v109_v44 }
 0x13d   :  { %v124_v32 = vpop.permute.xlu1 %123  ;;  %v90_v34 = vpop.permute.xlu0 %89  ;;  %v82_v47 = vsel %vm81_vm0, %v80_v40, %v67_v16 }
 0x13e   :  { %v92_v38 = vmul.f32 %v90_v34, %v87_v35  ;;  %v126_v50 = vmul.f32 %v124_v32, %v121_v45 }
 0x140   :  { %v97_v41 = vadd.f32 %v95_v21, %v92_v38  ;;  %v131_v59 = vadd.f32 %v129_v25, %v126_v50 }
 0x142   :  { %v141_v37 = vpop.permute.xlu1 %140  ;;  %v99_v51 = vsel %vm98_vm1, %v97_v41, %v82_v47  ;;  %v180_v56 = vpop.permute.xlu0 %179 }
 0x143   :  { %v143_v48 = vmul.f32 %v141_v37, %v138_v43  ;;  %v116_v57 = vsel %vm115_vm2, %v114_v53, %v99_v51 }
 0x144   :  { %v133_v63 = vsel %vm132_vm3, %v131_v59, %v116_v57 }
 0x145   :  { %v148_v58 = vadd.f32 %v146_v28, %v143_v48 }
 0x147   :  { %v158_v42 = vpop.permute.xlu1 %157  ;;  %v150_v0 = vsel %vm149_vm4, %v148_v58, %v133_v63 }
 0x148   :  { %v160_v52 = vmul.f32 %v158_v42, %v155_v46 }
 0x14a   :  { %v165_v60 = vadd.f32 %v163_v27, %v160_v52 }
 0x14c   :  { %v175_v54 = vpop.permute.xlu1 %174  ;;  %v167_v1 = vsel %vm166_vm5, %v165_v60, %v150_v0 }
 0x14d   :  { %v177_v55 = vmul.f32 %v175_v54, %v172_v49 }
 0x14f   :  { %v182_v61 = vadd.f32 %v180_v56, %v177_v55 }
 0x150   :  { %v187_v62 = vpop.permute.xlu1 %186 }
 0x151   :  { %vm189_vm7 = vcmp.ge.f32.partialorder %v52_v31, %v187_v62  ;;  %v184_v3 = vsel %vm183_vm6, %v182_v61, %v167_v1 }
 0x154   :  { %v192_v2 = vpop.permute.xlu1 %191 }
 0x155   :  { %v194_v4 = vsel %vm189_vm7, %v192_v2, %v184_v3 }
 0x156   :  { %195 = vst [vmem:[#allocation8] sm:$0xff] %v194_v4 }
 0x157   :  { %324 = shalt.err (!%p321_p0)
}
 0x158   :  { %s325_s24 = scalar_lea.hbm %s425_s3, 128 }
 0x159   :  { %p326_p1 = scmp.ne.s32.totalorder %s425_s3, %s325_s24  ;;  %p329_p2 = scmp.lt.u32.totalorder %s325_s24, %s425_s3 }
 0x15b   :  { %p331_p3 = pnand %p329_p2, %p326_p1 }
 0x15d   :  { %334 = shalt.err (!%p331_p3)
}
 0x15e   :  { %205 = dma.vmem_to_hbm [thread:$0]  %s203_s20, 128, %s425_s3, [#allocation4]  }
 0x15f   :  { %339 = dma.done.wait [#allocation4], 128  }
 0x160   :  { %340 = vsyncadd [#allocation4], 4294967168 }
 0x161   :  { %209 = vsyncpa [#allocation3], 1 }
 0x162   :  { %210 = vsyncpa [#allocation6], 1 }
 0x163   :  { %211 = vsyncpa [#allocation4], 1 }

</bundles_post_ra>
